<compile_context>
chip_gen: v7x
topology: tpu7x:2x2x1
jax: 0.10.0
libtpu: 0.0.40
codegen_flags: <defaults>
</compile_context>

<pallas_src>
import jax
import jax.numpy as jnp
from jax.experimental import pallas as pl
from jax.experimental.pallas import tpu as pltpu


def _h_swish_kernel(x_ref, o_ref):
    # f32 math is free on an HBM-bound elementwise op and matches the f32
    # reference bit-for-bit; only the load/store dtype stays narrow.
    x = x_ref[...].astype(jnp.float32)
    hsig = jnp.clip(x + 3.0, 0.0, 6.0) * (1.0 / 6.0)
    o_ref[...] = (x * hsig).astype(o_ref.dtype)


def _sublane_multiple(itemsize):
    # Sublane packing requirement for the second-to-last block dim.
    return {4: 8, 2: 16, 1: 32}.get(itemsize, 8)


def _num_tensorcores():
    # v7x packs 2 TensorCores per chip; v5e/v6e have 1.
    try:
        kind = jax.devices()[0].device_kind.lower()
    except Exception:
        return 1
    return 2 if "v7" in kind else 1


def _pick_cols(n):
    """Largest lane-dense width in {1024,512,256,128} that divides n (or None)."""
    for c in (1024, 512, 256, 128):
        if n % c == 0:
            return c
    return None


def _choose_tile_rows(rows, cols, itemsize, num_cores):
    sub = _sublane_multiple(itemsize)
    if rows <= sub:
        return rows  # one full-extent block (always legal)

    # ~4 MiB per tile: in + out double-buffered ~16 MiB live VMEM.  Kept capped
    # (not scaled with chip VMEM): v7x has only 64 MiB per TC, and the measured
    # HBM-roofline fraction is flat past ~2-4 MiB tiles anyway.
    budget = 4 * 1024 * 1024
    tile_rows = max(sub, (budget // (cols * itemsize)) // sub * sub)

    if num_cores <= 1:
        # Grid is a serial loop on 1-TC chips: fewer, larger steps wins.
        return rows if rows <= tile_rows else tile_rows

    # Multi-TC (v7x): make the step count a multiple of the core count and
    # size tiles near-evenly so both cores drive balanced HBM streams.
    steps = max(num_cores, pl.cdiv(rows, tile_rows))
    steps = pl.cdiv(steps, num_cores) * num_cores
    even_rows = pl.cdiv(pl.cdiv(rows, steps), sub) * sub
    return max(sub, min(tile_rows, even_rows))


def _h_swish_2d(x2):
    """Runs the kernel on a lane-dense (rows, cols) view (cols is the full width)."""
    rows, cols = x2.shape
    itemsize = jnp.dtype(x2.dtype).itemsize
    tile_rows = _choose_tile_rows(rows, cols, itemsize, _num_tensorcores())
    grid = (pl.cdiv(rows, tile_rows),)
    elems = rows * cols

    return pl.pallas_call(
        _h_swish_kernel,
        out_shape=jax.ShapeDtypeStruct((rows, cols), x2.dtype),
        grid_spec=pltpu.PrefetchScalarGridSpec(
            num_scalar_prefetch=0,
            grid=grid,
            in_specs=[pl.BlockSpec((tile_rows, cols), lambda i: (i, 0))],
            out_specs=pl.BlockSpec((tile_rows, cols), lambda i: (i, 0)),
        ),
        compiler_params=pltpu.CompilerParams(
            # Balanced even-step grid (see _choose_tile_rows) lets the runtime
            # shard this axis across both TensorCores on v7x; CORE_PARALLEL is
            # the stronger hint but left off until verified on v7x hardware.
            dimension_semantics=("parallel",),
            vmem_limit_bytes=32 * 1024 * 1024,
        ),
        cost_estimate=pl.CostEstimate(
            flops=5 * elems,              # add, 2x clip cmp/select, 2x mul
            transcendentals=0,
            bytes_accessed=2 * elems * itemsize,
        ),
    )(x2)


def h_swish(x):
    """Applies hard-swish elementwise to a tensor of any shape via Pallas."""
    orig_shape = x.shape
    total = x.size
    if total == 0:
        return x
    x_flat = x.reshape(-1)

    cols = _pick_cols(total)
    if cols is not None:
        # Fast path: zero-copy reshape to a lane-dense slab, no padding.
        return _h_swish_2d(x_flat.reshape(total // cols, cols)).reshape(orig_shape)

    prefix = (total // 128) * 128
    if prefix == 0:
        # Tiny tensor (<128 elements): one full-extent block.
        return _h_swish_2d(x_flat.reshape(1, total)).reshape(orig_shape)

    # Fallback for sizes not divisible by 128: 128-aligned prefix through the
    # main kernel + a <128-element tail through a full-extent-block kernel.
    # Avoids jnp.pad's full extra read+write of the whole tensor.
    cols = _pick_cols(prefix)  # prefix is a multiple of 128 -> never None
    main = _h_swish_2d(x_flat[:prefix].reshape(prefix // cols, cols)).reshape(-1)
    tail = _h_swish_2d(x_flat[prefix:].reshape(1, total - prefix)).reshape(-1)
    return jnp.concatenate([main, tail]).reshape(orig_shape)


def _h_swish_ref(x):
    xf = x.astype(jnp.float32)
    return (xf * (jnp.clip(xf + 3.0, 0.0, 6.0) * (1.0 / 6.0))).astype(x.dtype)


if __name__ == "__main__":
    key = jax.random.PRNGKey(0)
    # Small NCHW feature map consistent with how the module is used.
    x = jax.random.normal(key, (2, 4, 16, 16), dtype=jnp.float32) * 4.0
    out = jax.block_until_ready(h_swish(x))
    ref = _h_swish_ref(x)
    assert out.shape == x.shape and out.dtype == x.dtype
    assert jnp.allclose(out, ref, atol=1e-5, rtol=1e-5), "mismatch vs reference"

    # Also exercise the pad-free fallback path (size not divisible by 128).
    x2 = jax.random.normal(jax.random.PRNGKey(1), (2, 3, 9, 9), dtype=jnp.float32) * 4.0
    out2 = jax.block_until_ready(h_swish(x2))
    assert out2.shape == x2.shape and out2.dtype == x2.dtype
    assert jnp.allclose(out2, _h_swish_ref(x2), atol=1e-5, rtol=1e-5), "fallback mismatch"

    print("KERNEL_OK")
</pallas_src>

<mosaic_0001>
module attributes {stable_mosaic.version = 11 : i64} {
  func.func @_h_swish_kernel(%arg0: i32, %arg1: memref<2x1024xf32, #tpu.memory_space<vmem>>, %arg2: memref<2x1024xf32, #tpu.memory_space<vmem>>) attributes {dimension_semantics = [#tpu.dimension_semantics<parallel>], iteration_bounds = array<i64: 1>, scalar_prefetch = 0 : i64, scratch_operands = 0 : i64, tpu.core_type = #tpu.core_type<tc>, window_params = [{transform_indices = @transform_0, window_bounds = array<i64: 2, 1024>}, {transform_indices = @transform_1, window_bounds = array<i64: 2, 1024>}]} {
    %c0 = arith.constant 0 : index
    %c0_0 = arith.constant 0 : index
    %0 = vector.load %arg1[%c0, %c0_0] : memref<2x1024xf32, #tpu.memory_space<vmem>>, vector<2x1024xf32>
    %cst = arith.constant 3.000000e+00 : f32
    %1 = vector.broadcast %cst : f32 to vector<2x1024xf32>
    %2 = arith.addf %0, %1 : vector<2x1024xf32>
    %cst_1 = arith.constant 0.000000e+00 : f32
    %cst_2 = arith.constant 6.000000e+00 : f32
    %3 = vector.broadcast %cst_1 : f32 to vector<2x1024xf32>
    %4 = arith.maximumf %3, %2 : vector<2x1024xf32>
    %5 = vector.broadcast %cst_2 : f32 to vector<2x1024xf32>
    %6 = arith.minimumf %5, %4 : vector<2x1024xf32>
    %cst_3 = arith.constant 0.166666672 : f32
    %7 = vector.broadcast %cst_3 : f32 to vector<2x1024xf32>
    %8 = arith.mulf %6, %7 : vector<2x1024xf32>
    %9 = arith.mulf %0, %8 : vector<2x1024xf32>
    %c0_4 = arith.constant 0 : index
    %c0_5 = arith.constant 0 : index
    %10 = vector.load %arg2[%c0_4, %c0_5] : memref<2x1024xf32, #tpu.memory_space<vmem>>, vector<2x1024xf32>
    tpu.vector_store %arg2[%c0_4, %c0_5], %9 {strides = array<i32>} : memref<2x1024xf32, #tpu.memory_space<vmem>>, vector<2x1024xf32>,
    return
  }
  func.func @transform_0(%arg0: i32) -> (i32, i32) {
    %c0_i32 = arith.constant 0 : i32
    %c0_i32_0 = arith.constant 0 : i32
    return %arg0, %c0_i32 : i32, i32
  }
  func.func @transform_1(%arg0: i32) -> (i32, i32) {
    %c0_i32 = arith.constant 0 : i32
    %c0_i32_0 = arith.constant 0 : i32
    return %arg0, %c0_i32 : i32, i32
  }
}

</mosaic_0001>

<bundles_post_ra>
// kernel: tpu_custom_call.1
= control target key start
LH: loop header
LB: loop body
LE: loop exit
PB: predicated region body
PF: predicated region fallthrough
CT: control target
= control target key end

     0   :  { %6 = vsyncpa [#allocation3], 0  ;;  %s136_s0 = inlined_call_operand.hbm [shape: f32[2,1024], index: 0, kind: input, shape index: {}]   ;;  %s137_s1 = inlined_call_operand.hbm [shape: f32[2,1024], index: 1, kind: output, shape index: {}]  }
   0x1   :  { %7 = vsyncpa [#allocation4], 0  ;;  %s100_s6 = smov [#allocation2]   ;;  %s52_s10 = scalar_lea.hbm %s136_s0, 256 }
   0x2   :  { %s14_s7 = sshll.u32 %s100_s6, 4  ;;  %p53_p0 = scmp.ne.s32.totalorder %s136_s0, %s52_s10  ;;  %s15_s7 = int_to_ptr.vmem [resolvable:$true] %s14_s7 }
   0x3   :  { %p56_p1 = scmp.lt.u32.totalorder %s52_s10, %s136_s0 }
   0x5   :  { %p58_p2 = pnand %p56_p1, %p53_p0 }
   0x7   :  { %61 = shalt.err (!%p58_p2)
}
   0x8   :  { %s62_s15 = scalar_lea.vmem %s15_s7, 256  ;;  %p67_p4 = scmp.lt.s32.totalorder %s15_s7, %s15_s7 }
   0x9   :  { %p63_p3 = scmp.ne.s32.totalorder %s15_s7, %s62_s15  ;;  %p68_p5 = scmp.lt.s32.totalorder %s62_s15, %s62_s15 }
   0xb   :  { %p69_p6 = por %p68_p5, %p67_p4 }
   0xd   :  { %p70_p7 = pnand %p69_p6, %p63_p3 }
   0xf   :  { %73 = shalt.err (!%p70_p7)
}
  0x10   :  { %17 = dma.hbm_to_vmem [thread:$0]  %s136_s0, 256, %s15_s7, [#allocation3]  }
  0x11   :  { %96 = dma.done.wait [#allocation3], 256  }
  0x12   :  { %97 = vsyncadd [#allocation3], 4294967040  ;;  %v21_v0 = vld [vmem:[#allocation2] sm:$0xff]  ;;  %v22_v1 = vld [vmem:[#allocation2 + $0x8] sm:$0xff]  ;;  %s101_s18 = smov [#allocation5]  }
  0x13   :  { %v23_v2 = vadd.f32 3.0, %v21_v0  ;;  %v24_v3 = vadd.f32 3.0, %v22_v1  ;;  %s41_s19 = sshll.u32 %s101_s18, 4  ;;  %s42_s19 = int_to_ptr.vmem [resolvable:$true] %s41_s19 }
  0x14   :  { %s74_s0 = scalar_lea.vmem %s42_s19, 256  ;;  %p79_p9 = scmp.lt.s32.totalorder %s42_s19, %s42_s19 }
  0x15   :  { %v25_v4 = vmax.f32 %v23_v2, 0.0  ;;  %v26_v5 = vmax.f32 %v24_v3, 0.0  ;;  %p75_p8 = scmp.ne.s32.totalorder %s42_s19, %s74_s0  ;;  %p80_p10 = scmp.lt.s32.totalorder %s74_s0, %s74_s0 }
  0x17   :  { %v27_v6 = vmin.f32 %v25_v4, 6.0  ;;  %v28_v7 = vmin.f32 %v26_v5, 6.0  ;;  %p81_p11 = por %p80_p10, %p79_p9 }
  0x19   :  { %v29_v8 = vmul.f32 0.16666667, %v27_v6  ;;  %v30_v9 = vmul.f32 0.16666667, %v28_v7  ;;  %p82_p12 = pnand %p81_p11, %p75_p8 }
  0x1b   :  { %v31_v10 = vmul.f32 %v29_v8, %v21_v0  ;;  %v32_v11 = vmul.f32 %v30_v9, %v22_v1 }
  0x1d   :  { %33 = vst [vmem:[#allocation5] sm:$0xff] %v31_v10  ;;  %34 = vst [vmem:[#allocation5 + $0x8] sm:$0xff] %v32_v11 }
  0x1e   :  { %85 = shalt.err (!%p82_p12)
}
  0x1f   :  { %s86_s22 = scalar_lea.hbm %s137_s1, 256 }
  0x20   :  { %p87_p13 = scmp.ne.s32.totalorder %s137_s1, %s86_s22  ;;  %p90_p0 = scmp.lt.u32.totalorder %s86_s22, %s137_s1 }
  0x22   :  { %p92_p1 = pnand %p90_p0, %p87_p13 }
  0x24   :  { %95 = shalt.err (!%p92_p1)
}
  0x25   :  { %44 = dma.vmem_to_hbm [thread:$0]  %s42_s19, 256, %s137_s1, [#allocation4]  }
  0x26   :  { %98 = dma.done.wait [#allocation4], 256  }
  0x27   :  { %99 = vsyncadd [#allocation4], 4294967040 }
  0x28   :  { %48 = vsyncpa [#allocation3], 1 }
  0x29   :  { %49 = vsyncpa [#allocation4], 1 }

</bundles_post_ra>
